<compile_context>
chip_gen: v7x
topology: tpu7x:2x2x1
jax: 0.10.0
libtpu: 0.0.40
codegen_flags: <defaults>
</compile_context>

<pallas_src>
import functools

import numpy as np
import jax
import jax.numpy as jnp
from jax.experimental import pallas as pl
from jax.experimental.pallas import tpu as pltpu


def _round_up(x: int, m: int) -> int:
    return ((x + m - 1) // m) * m


def default_intermediate_size(input_size: int, output_size: int) -> int:
    """Mirrors the module's default: int(e^(0.5*ln(in*out))) == int(sqrt(in*out))."""
    return int(np.power(np.e, 0.5 * np.log(input_size * output_size)))


@functools.lru_cache(maxsize=None)
def _pool_matrix_np(length: int, n_frame: int, rows_pad: int) -> np.ndarray:
    """Exact AdaptiveAvgPool1d(n_frame) as an (rows_pad, length) averaging matrix.

    Rows [n_frame:rows_pad) are zero padding (sublane alignment); they produce
    garbage output rows that the wrapper slices off.
    """
    P = np.zeros((rows_pad, length), dtype=np.float32)
    for i in range(n_frame):
        start = (i * length) // n_frame
        end = -((-(i + 1) * length) // n_frame)  # ceil((i+1)*L / n_frame)
        P[i, start:end] = 1.0 / float(end - start)
    return P


def adapter_kernel(x_ref, p_ref, w1_ref, b1_ref, w2_ref, b2_ref, o_ref):
    # x_ref:  (1, L, Din)  f32   current batch element
    # p_ref:  (Fp, L)      f32   shared pooling matrix (constant index_map)
    # w1_ref: (Din, Hp)    compute dtype ; b1_ref: (1, Hp) f32
    # w2_ref: (Hp, Dp)     compute dtype ; b2_ref: (1, Dp) f32
    # o_ref:  (1, Fp, Dp)  f32   lane-dense, unmasked stores
    x = x_ref[0]                                                         # (L, Din)

    # Adaptive average pooling, kept in f32 for accuracy.
    pooled = jnp.dot(p_ref[...], x, preferred_element_type=jnp.float32)  # (Fp, Din)

    # Linear 1 (+bias) and ReLU: matmul in compute dtype w/ f32 accumulation,
    # bias-add + ReLU on the VPU in f32.
    h = jnp.dot(pooled.astype(w1_ref.dtype), w1_ref[...],
                preferred_element_type=jnp.float32) + b1_ref[...]        # (Fp, Hp)
    h = jnp.maximum(h, 0.0)

    # Linear 2 (+bias).
    out = jnp.dot(h.astype(w2_ref.dtype), w2_ref[...],
                  preferred_element_type=jnp.float32) + b2_ref[...]      # (Fp, Dp)

    o_ref[0] = out.astype(o_ref.dtype)


@functools.partial(jax.jit,
                   static_argnames=("input_sample_hz", "output_sample_hz", "compute_dtype"))
def adapter_forward(x, params, *, input_sample_hz, output_sample_hz,
                    compute_dtype="float32"):
    """x: (B, L, Din) float32. Returns (B, n_frame, Dout), matching Adapter_Model.forward.

    compute_dtype: "float32" (exact) or "bfloat16" (bf16 MXU path on v6e/v7x,
    f32 accumulation / bias / ReLU / pooling).
    """
    B, L, Din = x.shape
    W1, b1, W2, b2 = params
    H = W1.shape[1]
    Dout = W2.shape[1]
    cdt = jnp.dtype(compute_dtype)
    cd_bytes = cdt.itemsize

    n_frame = int(L * float(output_sample_hz) / input_sample_hz)
    if n_frame <= 0:
        raise ValueError(
            f"n_frame = {n_frame} must be positive (L={L}, hz {input_sample_hz}->{output_sample_hz})")

    Fp = _round_up(n_frame, 8)    # sublane-aligned pooled-row count
    Hp = _round_up(H, 128)        # lane-dense hidden width (MXU-aligned contraction)
    Dp = _round_up(Dout, 128)     # lane-dense output width (unmasked vst)
    # NOTE: Din is left as-is; padding x's feature dim in the wrapper would double
    # its HBM read.  Prefer a 128-multiple Din at the data source.

    # Shared (Fp, L) pooling matrix — no quadratic block-diagonal construction.
    P = jnp.asarray(_pool_matrix_np(L, n_frame, Fp))

    # Zero-pad hidden / output dims (numerically exact: ReLU(0+0)=0, padded W2
    # rows contribute 0) and cast weights to the matmul compute dtype.
    W1p = jnp.pad(W1, ((0, 0), (0, Hp - H))).astype(cdt)
    b1p = jnp.pad(b1.reshape(1, H).astype(jnp.float32), ((0, 0), (0, Hp - H)))
    W2p = jnp.pad(W2, ((0, Hp - H), (0, Dp - Dout))).astype(cdt)
    b2p = jnp.pad(b2.reshape(1, Dout).astype(jnp.float32), ((0, 0), (0, Dp - Dout)))

    # VMEM limit with headroom (double-buffered x/out tiles + resident weights).
    blk_bytes = (2 * L * Din * 4 + Fp * L * 4
                 + Din * Hp * cd_bytes + Hp * 4
                 + Hp * Dp * cd_bytes + Dp * 4
                 + 2 * Fp * Dp * 4)
    vmem_limit = int(min(max(4 * blk_bytes, 8 * 1024 * 1024), 48 * 1024 * 1024))

    flops = 2 * B * (Fp * L * Din + Fp * Din * Hp + Fp * Hp * Dp)
    bytes_accessed = (B * L * Din * 4 + Fp * L * 4
                      + Din * Hp * cd_bytes + Hp * Dp * cd_bytes
                      + Hp * 4 + Dp * 4 + B * Fp * Dp * 4)

    out_pad = pl.pallas_call(
        adapter_kernel,
        out_shape=jax.ShapeDtypeStruct((B, Fp, Dp), jnp.float32),
        grid=(B,),  # one batch element per grid point; shardable across TCs on v7x
        in_specs=[
            pl.BlockSpec((1, L, Din), lambda b: (b, 0, 0)),   # streamed per-batch tile
            pl.BlockSpec((Fp, L), lambda b: (0, 0)),          # shared pooling matrix
            pl.BlockSpec((Din, Hp), lambda b: (0, 0)),        # resident weights / biases
            pl.BlockSpec((1, Hp), lambda b: (0, 0)),
            pl.BlockSpec((Hp, Dp), lambda b: (0, 0)),
            pl.BlockSpec((1, Dp), lambda b: (0, 0)),
        ],
        out_specs=pl.BlockSpec((1, Fp, Dp), lambda b: (b, 0, 0)),
        compiler_params=pltpu.CompilerParams(
            dimension_semantics=("parallel",),
            vmem_limit_bytes=vmem_limit),
        cost_estimate=pl.CostEstimate(flops=flops, transcendentals=0,
                                      bytes_accessed=bytes_accessed),
    )(x.astype(jnp.float32), P, W1p, b1p, W2p, b2p)

    return out_pad[:, :n_frame, :Dout]


def reference_forward(x, params, input_sample_hz, output_sample_hz):
    """Pure-JAX reference mirroring the PyTorch forward (independent pooling impl)."""
    W1, b1, W2, b2 = params
    B, L, Din = x.shape
    n_frame = int(L * float(output_sample_hz) / input_sample_hz)
    pooled_frames = []
    for i in range(n_frame):
        start = (i * L) // n_frame
        end = -((-(i + 1) * L) // n_frame)
        pooled_frames.append(jnp.mean(x[:, start:end, :], axis=1))
    pooled = jnp.stack(pooled_frames, axis=1)  # (B, n_frame, Din)
    h = jnp.maximum(pooled @ W1 + b1, 0.0)
    return h @ W2 + b2


if __name__ == "__main__":
    # Small deterministic config consistent with the module's forward.
    batch = 2
    length = 16
    input_size = 64
    output_size = 16
    intermediate_size = 32          # module also allows a derived default
    input_sample_hz = 16000
    output_sample_hz = 6000         # -> n_frame = int(16 * 0.375) = 6 (uneven windows)

    key = jax.random.PRNGKey(0)
    kx, k1, k2, k3, k4 = jax.random.split(key, 5)

    x = jax.random.normal(kx, (batch, length, input_size), dtype=jnp.float32)

    # Deterministic synthetic parameters (shapes match torch.nn.Linear weights^T).
    W1 = jax.random.normal(k1, (input_size, intermediate_size), dtype=jnp.float32) * 0.05
    b1 = jax.random.normal(k2, (intermediate_size,), dtype=jnp.float32) * 0.05
    W2 = jax.random.normal(k3, (intermediate_size, output_size), dtype=jnp.float32) * 0.05
    b2 = jax.random.normal(k4, (output_size,), dtype=jnp.float32) * 0.05
    params = (W1, b1, W2, b2)

    ref = reference_forward(x, params, input_sample_hz, output_sample_hz)

    # Exact f32 path.
    out_f32 = jax.block_until_ready(adapter_forward(
        x, params, input_sample_hz=input_sample_hz, output_sample_hz=output_sample_hz,
        compute_dtype="float32"))
    assert out_f32.shape == ref.shape, (out_f32.shape, ref.shape)
    assert jnp.allclose(out_f32, ref, atol=1e-4, rtol=1e-4), \
        float(jnp.max(jnp.abs(out_f32 - ref)))

    # bf16-matmul path (v6e/v7x MXU), f32 accumulation / pooling / bias / ReLU.
    out_bf16 = jax.block_until_ready(adapter_forward(
        x, params, input_sample_hz=input_sample_hz, output_sample_hz=output_sample_hz,
        compute_dtype="bfloat16"))
    assert out_bf16.shape == ref.shape, (out_bf16.shape, ref.shape)
    assert jnp.allclose(out_bf16, ref, atol=2e-2, rtol=2e-2), \
        float(jnp.max(jnp.abs(out_bf16 - ref)))

    print("KERNEL_OK")
</pallas_src>

<mosaic_0001>
module attributes {stable_mosaic.version = 11 : i64} {
  func.func @adapter_kernel(%arg0: i32, %arg1: memref<1x16x64xf32, #tpu.memory_space<vmem>>, %arg2: memref<8x16xf32, #tpu.memory_space<vmem>>, %arg3: memref<64x128xf32, #tpu.memory_space<vmem>>, %arg4: memref<1x128xf32, #tpu.memory_space<vmem>>, %arg5: memref<128x128xf32, #tpu.memory_space<vmem>>, %arg6: memref<1x128xf32, #tpu.memory_space<vmem>>, %arg7: memref<1x8x128xf32, #tpu.memory_space<vmem>>) attributes {dimension_semantics = [#tpu.dimension_semantics<parallel>], iteration_bounds = array<i64: 2>, scalar_prefetch = 0 : i64, scratch_operands = 0 : i64, tpu.core_type = #tpu.core_type<tc>, window_params = [{transform_indices = @transform_0, window_bounds = array<i64: 1, 16, 64>}, {pipeline_mode = #tpu.pipeline_mode<synchronous>, transform_indices = @transform_1, window_bounds = array<i64: 8, 16>}, {pipeline_mode = #tpu.pipeline_mode<synchronous>, transform_indices = @transform_2, window_bounds = array<i64: 64, 128>}, {pipeline_mode = #tpu.pipeline_mode<synchronous>, transform_indices = @transform_3, window_bounds = array<i64: 1, 128>}, {pipeline_mode = #tpu.pipeline_mode<synchronous>, transform_indices = @transform_4, window_bounds = array<i64: 128, 128>}, {pipeline_mode = #tpu.pipeline_mode<synchronous>, transform_indices = @transform_5, window_bounds = array<i64: 1, 128>}, {transform_indices = @transform_6, window_bounds = array<i64: 1, 8, 128>}]} {
    %c0 = arith.constant 0 : index
    %c0_0 = arith.constant 0 : index
    %c0_1 = arith.constant 0 : index
    %0 = vector.load %arg1[%c0, %c0_0, %c0_1] : memref<1x16x64xf32, #tpu.memory_space<vmem>>, vector<1x16x64xf32>
    %1 = vector.shape_cast %0 : vector<1x16x64xf32> to vector<16x64xf32>
    %c0_2 = arith.constant 0 : index
    %c0_3 = arith.constant 0 : index
    %2 = vector.load %arg2[%c0_2, %c0_3] : memref<8x16xf32, #tpu.memory_space<vmem>>, vector<8x16xf32>
    %cst = arith.constant dense<0.000000e+00> : vector<8x64xf32>
    %3 = tpu.matmul %2, %1, %cst {dimension_numbers = #tpu.dot_dimension_numbers<[1], [0], [0], [1], [0, 0, 1, 1], [], []>} : vector<8x16xf32>, vector<16x64xf32>, vector<8x64xf32> -> vector<8x64xf32>
    %c0_4 = arith.constant 0 : index
    %c0_5 = arith.constant 0 : index
    %4 = vector.load %arg3[%c0_4, %c0_5] : memref<64x128xf32, #tpu.memory_space<vmem>>, vector<64x128xf32>
    %cst_6 = arith.constant dense<0.000000e+00> : vector<8x128xf32>
    %5 = tpu.matmul %3, %4, %cst_6 {dimension_numbers = #tpu.dot_dimension_numbers<[1], [0], [0], [1], [0, 0, 1, 1], [], []>} : vector<8x64xf32>, vector<64x128xf32>, vector<8x128xf32> -> vector<8x128xf32>
    %c0_7 = arith.constant 0 : index
    %c0_8 = arith.constant 0 : index
    %6 = vector.load %arg4[%c0_7, %c0_8] : memref<1x128xf32, #tpu.memory_space<vmem>>, vector<1x128xf32>
    %7 = vector.broadcast %6 : vector<1x128xf32> to vector<8x128xf32>
    %8 = arith.addf %5, %7 : vector<8x128xf32>
    %cst_9 = arith.constant 0.000000e+00 : f32
    %9 = vector.broadcast %cst_9 : f32 to vector<8x128xf32>
    %10 = arith.maximumf %8, %9 : vector<8x128xf32>
    %c0_10 = arith.constant 0 : index
    %c0_11 = arith.constant 0 : index
    %11 = vector.load %arg5[%c0_10, %c0_11] : memref<128x128xf32, #tpu.memory_space<vmem>>, vector<128x128xf32>
    %cst_12 = arith.constant dense<0.000000e+00> : vector<8x128xf32>
    %12 = tpu.matmul %10, %11, %cst_12 {dimension_numbers = #tpu.dot_dimension_numbers<[1], [0], [0], [1], [0, 0, 1, 1], [], []>} : vector<8x128xf32>, vector<128x128xf32>, vector<8x128xf32> -> vector<8x128xf32>
    %c0_13 = arith.constant 0 : index
    %c0_14 = arith.constant 0 : index
    %13 = vector.load %arg6[%c0_13, %c0_14] : memref<1x128xf32, #tpu.memory_space<vmem>>, vector<1x128xf32>
    %14 = vector.broadcast %13 : vector<1x128xf32> to vector<8x128xf32>
    %15 = arith.addf %12, %14 : vector<8x128xf32>
    %c0_15 = arith.constant 0 : index
    %c0_16 = arith.constant 0 : index
    %c0_17 = arith.constant 0 : index
    %16 = vector.load %arg7[%c0_15, %c0_16, %c0_17] : memref<1x8x128xf32, #tpu.memory_space<vmem>>, vector<1x8x128xf32>
    %17 = vector.shape_cast %16 : vector<1x8x128xf32> to vector<8x128xf32>
    %18 = vector.shape_cast %15 : vector<8x128xf32> to vector<1x8x128xf32>
    tpu.vector_store %arg7[%c0_15, %c0_16, %c0_17], %18 {strides = array<i32>} : memref<1x8x128xf32, #tpu.memory_space<vmem>>, vector<1x8x128xf32>,
    return
  }
  func.func @transform_0(%arg0: i32) -> (i32, i32, i32) {
    %c0_i32 = arith.constant 0 : i32
    %c0_i32_0 = arith.constant 0 : i32
    %c0_i32_1 = arith.constant 0 : i32
    return %arg0, %c0_i32, %c0_i32_0 : i32, i32, i32
  }
  func.func @transform_1(%arg0: i32) -> (i32, i32) {
    %c0_i32 = arith.constant 0 : i32
    %c0_i32_0 = arith.constant 0 : i32
    %c0_i32_1 = arith.constant 0 : i32
    return %c0_i32, %c0_i32_0 : i32, i32
  }
  func.func @transform_2(%arg0: i32) -> (i32, i32) {
    %c0_i32 = arith.constant 0 : i32
    %c0_i32_0 = arith.constant 0 : i32
    %c0_i32_1 = arith.constant 0 : i32
    return %c0_i32, %c0_i32_0 : i32, i32
  }
  func.func @transform_3(%arg0: i32) -> (i32, i32) {
    %c0_i32 = arith.constant 0 : i32
    %c0_i32_0 = arith.constant 0 : i32
    %c0_i32_1 = arith.constant 0 : i32
    return %c0_i32, %c0_i32_0 : i32, i32
  }
  func.func @transform_4(%arg0: i32) -> (i32, i32) {
    %c0_i32 = arith.constant 0 : i32
    %c0_i32_0 = arith.constant 0 : i32
    %c0_i32_1 = arith.constant 0 : i32
    return %c0_i32, %c0_i32_0 : i32, i32
  }
  func.func @transform_5(%arg0: i32) -> (i32, i32) {
    %c0_i32 = arith.constant 0 : i32
    %c0_i32_0 = arith.constant 0 : i32
    %c0_i32_1 = arith.constant 0 : i32
    return %c0_i32, %c0_i32_0 : i32, i32
  }
  func.func @transform_6(%arg0: i32) -> (i32, i32, i32) {
    %c0_i32 = arith.constant 0 : i32
    %c0_i32_0 = arith.constant 0 : i32
    %c0_i32_1 = arith.constant 0 : i32
    return %arg0, %c0_i32, %c0_i32_0 : i32, i32, i32
  }
}

</mosaic_0001>

<bundles_post_ra>
// kernel: adapter_forward.1
= control target key start
LH: loop header
LB: loop body
LE: loop exit
PB: predicated region body
PF: predicated region fallthrough
CT: control target
= control target key end

     0   :  { %s765_s21 = smov 0   ;;  %s883_s0 = inlined_call_operand.vmem [shape: f32[2,16,64], index: 0, kind: input, shape index: {}]   ;;  %s884_s1 = inlined_call_operand.vmem [shape: f32[8,16], index: 1, kind: input, shape index: {}]   ;;  %s885_s2 = inlined_call_operand.vmem [shape: f32[64,128], index: 2, kind: input, shape index: {}]   ;;  %s886_s3 = inlined_call_operand.vmem [shape: f32[1,128], index: 3, kind: input, shape index: {}]   ;;  %s887_s4 = inlined_call_operand.vmem [shape: f32[128,128], index: 4, kind: input, shape index: {}]   ;;  %s888_s5 = inlined_call_operand.vmem [shape: f32[1,128], index: 5, kind: input, shape index: {}]   ;;  %s889_s6 = inlined_call_operand.vmem [shape: f32[2,8,128], index: 6, kind: output, shape index: {}]  }
   0x1 LB: > { %s564_s22 = sadd.s32 4294967295, %s725_s21   ;;  %p568_p0 = scmp.ge.s32.totalorder %s725_s21, 1  ;;  %s725_s21 = sphi %s765_s21, %s16_s21  }
   0x2   : > { %p212_p1 = scmp.lt.s32.totalorder %s725_s21, 3 }
   0x4   : > { %p213_p2 = pnand %p568_p0, %p212_p1 }
   0x5   : > { %p241_p3 = scmp.lt.s32.totalorder (!%p213_p2), %s564_s22, 1  ;;  %v727_v0 = vmov (!%p213_p2), 0.0|0.0   ;;  %vm728_vm0 = vmmov (!%p213_p2), 0   ;;  %v729_v1 = vmov (!%p213_p2), 0.0   ;;  %v327_v2 = vld [vmem:[%s885_s2] sm:$0xff] (!%p213_p2)  ;;  %v328_v5 = vld [vmem:[%s885_s2 + $0x8] sm:$0xff] (!%p213_p2) }
   0x6   : > { %216 = sbr.rel (%p213_p2) target bundleno = 665 (0x299), region = 44  ;;  %669 = vmatprep.subr.bf16.mxu1 (!%p213_p2), %v727_v0  ;;  %612 = vmatprep.mubr.msk.f32.mxu1 (!%p213_p2), %vm728_vm0, %v729_v1  ;;  %v252_v7 = vld [vmem:[%s884_s1] sm:$0xff] (!%p213_p2)  ;;  %vm253_vm1 = vcmask (!%p213_p2), 130048   ;;  %v673_v8 = vpack.c.bf16 (!%p213_p2), %v328_v5, %v327_v2  ;;  %v329_v9 = vld [vmem:[%s885_s2 + $0x10] sm:$0xff] (!%p213_p2)  ;;  %v330_v10 = vld [vmem:[%s885_s2 + $0x18] sm:$0xff] (!%p213_p2)  ;;  %vm342_vm2 = vcmask (!%p213_p2), 523264  }
   0x7   : > { %684 = vmatprep.subr.bf16.mxu0 (!%p213_p2), %v727_v0  ;;  %666 = vmatprep.mubr.msk.f32.mxu0 (!%p213_p2), %vm728_vm0, %v729_v1  ;;  %v676_v11 = vpack.c.bf16 (!%p213_p2), %v330_v10, %v329_v9  ;;  %v331_v12 = vld [vmem:[%s885_s2 + $0x20] sm:$0xff] (!%p213_p2)  ;;  %v332_v13 = vld [vmem:[%s885_s2 + $0x28] sm:$0xff] (!%p213_p2)  ;;  %v333_v15 = vld [vmem:[%s885_s2 + $0x30] sm:$0xff] (!%p213_p2) }
   0x8   : > { %v679_v14 = vpack.c.bf16 (!%p213_p2), %v332_v13, %v331_v12  ;;  %v334_v16 = vld [vmem:[%s885_s2 + $0x38] sm:$0xff] (!%p213_p2)  ;;  %v417_v18 = vld [vmem:[%s887_s4] sm:$0xff] (!%p213_p2)  ;;  %v418_v19 = vld [vmem:[%s887_s4 + $0x8] sm:$0xff] (!%p213_p2) }
   0x9   : > { %v682_v17 = vpack.c.bf16 (!%p213_p2), %v334_v16, %v333_v15  ;;  %v419_v20 = vld [vmem:[%s887_s4 + $0x10] sm:$0xff] (!%p213_p2)  ;;  %v685_v21 = vpack.c.bf16 (!%p213_p2), %v418_v19, %v417_v18  ;;  %v420_v22 = vld [vmem:[%s887_s4 + $0x18] sm:$0xff] (!%p213_p2)  ;;  %v421_v24 = vld [vmem:[%s887_s4 + $0x20] sm:$0xff] (!%p213_p2) }
   0xa   : > { %v688_v23 = vpack.c.bf16 (!%p213_p2), %v420_v22, %v419_v20  ;;  %v422_v25 = vld [vmem:[%s887_s4 + $0x28] sm:$0xff] (!%p213_p2)  ;;  %v423_v27 = vld [vmem:[%s887_s4 + $0x30] sm:$0xff] (!%p213_p2)  ;;  %v424_v28 = vld [vmem:[%s887_s4 + $0x38] sm:$0xff] (!%p213_p2) }
   0xb   : > { %686 = vmatpush3.bf16.msra.mxu0 (!%p213_p2), %v685_v21  ;;  %v691_v26 = vpack.c.bf16 (!%p213_p2), %v422_v25, %v421_v24  ;;  %v694_v29 = vpack.c.bf16 (!%p213_p2), %v424_v28, %v423_v27  ;;  %v425_v30 = vld [vmem:[%s887_s4 + $0x40] sm:$0xff] (!%p213_p2)  ;;  %v426_v31 = vld [vmem:[%s887_s4 + $0x48] sm:$0xff] (!%p213_p2)  ;;  %v427_v33 = vld [vmem:[%s887_s4 + $0x50] sm:$0xff] (!%p213_p2) }
   0xc   : > { %687 = vmatprep.subr.bf16.mxu0 (!%p213_p2), %v727_v0  ;;  %v697_v32 = vpack.c.bf16 (!%p213_p2), %v426_v31, %v425_v30  ;;  %v428_v34 = vld [vmem:[%s887_s4 + $0x58] sm:$0xff] (!%p213_p2)  ;;  %v429_v36 = vld [vmem:[%s887_s4 + $0x60] sm:$0xff] (!%p213_p2)  ;;  %v430_v37 = vld [vmem:[%s887_s4 + $0x68] sm:$0xff] (!%p213_p2) }
   0xd   : > { %s891_s22 = smov (!%p241_p3, %s564_s22), 1  ;;  %v700_v35 = vpack.c.bf16 %v428_v34, %v427_v33  ;;  %v703_v38 = vpack.c.bf16 %v430_v37, %v429_v36  ;;  %v431_v41 = vld [vmem:[%s887_s4 + $0x70] sm:$0xff]  ;;  %v432_v42 = vld [vmem:[%s887_s4 + $0x78] sm:$0xff]  ;;  %v573_v44 = vld [vmem:[%s886_s3] ss:$0 sm:$0xff] }
   0xe   : > { %s578_s23 = sshll.u32 %s891_s22, 4  ;;  %v706_v43 = vpack.c.bf16 %v432_v42, %v431_v41  ;;  %s571_s11 = sshll.u32 %s891_s22, 3  ;;  %v575_v49 = vld [vmem:[%s888_s5] ss:$0 sm:$0xff] }
   0xf   : > { %s245_s26 = scalar_lea.vmem %s883_s0, %s578_s23  ;;  %689 = vmatpush3.bf16.msra.mxu0 %v688_v23  ;;  %s249_s16 = scalar_lea.vmem %s889_s6, %s571_s11 }
  0x10   : > { %v250_v3 = vld [vmem:[%s245_s26] sm:$0xff]  ;;  %v251_v4 = vld [vmem:[%s245_s26 + $0x8] sm:$0xff]  ;;  %690 = vmatprep.subr.bf16.mxu0 %v727_v0 }
  0x11   : > { %v670_v6 = vpack.c.bf16 %v251_v4, %v250_v3 }
  0x13   : > { %671 = vmatpush3.bf16.msra.mxu1 %v670_v6  ;;  %692 = vmatpush3.bf16.msra.mxu0 %v691_v26 }
  0x14   : > { %672 = vmatprep.subr.bf16.mxu1 %v727_v0  ;;  %693 = vmatprep.subr.bf16.mxu0 %v727_v0 }
  0x16   : > { %613 = vmatmul.mubr.msk.f32.vlgmr.msra.gmra.mrb[0].mxu1 %vm253_vm1, %v252_v7 }
  0x17   : > { %674 = vmatpush3.bf16.msra.mxu1 %v673_v8  ;;  %631 = vmatprep.mubr.msk.f32.mxu1 %vm728_vm0, %v729_v1 }
  0x18   : > { %675 = vmatprep.subr.bf16.mxu1 %v727_v0  ;;  %695 = vmatpush3.bf16.msra.mxu0 %v694_v29 }
  0x19   : > { %696 = vmatprep.subr.bf16.mxu0 %v727_v0 }
  0x1b   : > { %677 = vmatpush3.bf16.msra.mxu1 %v676_v11 }
  0x1c   : > { %678 = vmatprep.subr.bf16.mxu1 %v727_v0  ;;  %698 = vmatpush3.bf16.msra.mxu0 %v697_v32 }
  0x1d   : > { %699 = vmatprep.subr.bf16.mxu0 %v727_v0 }
  0x1f   : > { %680 = vmatpush3.bf16.msra.mxu1 %v679_v14 }
  0x20   : > { %681 = vmatprep.subr.bf16.mxu1 %v727_v0  ;;  %701 = vmatpush3.bf16.msra.mxu0 %v700_v35 }
  0x21   : > { %702 = vmatprep.subr.bf16.mxu0 %v727_v0 }
  0x23   : > { %683 = vmatpush3.bf16.msra.mxu1 %v682_v17 }
  0x24   : > { %704 = vmatpush3.bf16.msra.mxu0 %v703_v38 }
  0x25   : > { %705 = vmatprep.subr.bf16.mxu0 %v727_v0 }
  0x28   : > { %707 = vmatpush3.bf16.msra.mxu0 %v706_v43 }
  0xe9   : > { %v323_v39 = vpop.f32.mrb[0].mxu1 }
  0xea   : > { %v614_v40 = vpop.f32.mrb[1].mxu1  ;;  %632 = vmatmul.mubr.msk.f32.vlgmr.msra.gmra.mrb[2].mxu1 %vm342_vm2, %v323_v39 }
 0x1bd   : > { %v412_v45 = vpop.f32.mrb[2].mxu1 }
 0x1be   : > { %v413_v46 = vadd.f32 %v573_v44, %v412_v45  ;;  %v633_v47 = vpop.f32.mrb[3].mxu1 }
 0x1c0   : > { %v416_v48 = vmax.f32 %v413_v46, 0.0 }
 0x1c2   : > { %667 = vmatmul.mubr.f32.vlgmr.msra.gmra.mrb[0].mxu0 %v416_v48 }
 0x295   : > { %v506_v50 = vpop.f32.mrb[0].mxu0 }
 0x296   : > { %v507_v51 = vadd.f32 %v575_v49, %v506_v50  ;;  %v668_v52 = vpop.f32.mrb[1].mxu0 }
 0x298   : > { %510 = vst [vmem:[%s249_s16] sm:$0xff] %v507_v51 }
 0x299 PF: > { %s16_s21 = sadd.s32 1, %s725_s21  }
 0x29a   : > { %p13_p4 = scmp.ge.s32.totalorder %s16_s21, 4  }
 0x29c   :  { %15 = sbr.rel (!%p13_p4) target bundleno = 1 (0x1), region = 74 }

</bundles_post_ra>
